<compile_context>
chip_gen: v7x
topology: tpu7x:2x2x1
jax: 0.10.0
libtpu: 0.0.40
codegen_flags: <defaults>
</compile_context>

<pallas_src>
import jax
import jax.numpy as jnp
from jax.experimental import pallas as pl
from jax.experimental.pallas import tpu as pltpu

BN_EPS = 1e-5
LANE = 128


def _round_up(n, m=LANE):
    return ((n + m - 1) // m) * m


def _netwrapper_kernel(x_ref, wbb_ref, w1_ref, w2_ref, gb1_ref,
                       proj_ref, rep_ref):
    """One grid step = one augmented view's full (small) batch."""
    B = x_ref.shape[0]
    inv_b = 1.0 / B
    # Ones row for MXU-based batch reductions (keeps the XLU free).
    ones_row = jnp.ones((1, B), dtype=jnp.float32)

    # ---- synthetic backbone (hooked penultimate layer, already flattened) ----
    # bf16 operands on the MXU, f32 accumulation.
    rep = jnp.dot(x_ref[...], wbb_ref[...],
                  preferred_element_type=jnp.float32)        # [B, bb_p] f32
    rep_ref[...] = rep                                       # lane-dense store

    # ---- BYOL projector ----
    # Linear(bb_dim, prev_dim, bias=False)
    h = jnp.dot(rep.astype(jnp.bfloat16), w1_ref[...],
                preferred_element_type=jnp.float32)          # [B, prev_p] f32

    # BatchNorm1d(prev_dim), training mode (biased batch stats), affine.
    # Stats on MXU; centered variance for numerical stability; affine folded
    # into a single scale/shift; ReLU fused.
    mu1 = jnp.dot(ones_row, h, preferred_element_type=jnp.float32) * inv_b
    hc = h - mu1
    var1 = jnp.dot(ones_row, hc * hc, preferred_element_type=jnp.float32) * inv_b
    gb = gb1_ref[...]                                        # [2, prev_p] f32
    scale1 = gb[0:1, :] * jax.lax.rsqrt(var1 + BN_EPS)       # gamma * inv_std
    h = jnp.maximum(hc * scale1 + gb[1:2, :], 0.0)           # BN affine + ReLU

    # Linear(prev_dim, dim, bias=False)
    z = jnp.dot(h.astype(jnp.bfloat16), w2_ref[...],
                preferred_element_type=jnp.float32)          # [B, proj_p] f32

    # BatchNorm1d(dim, affine=False): batch stats only.
    mu2 = jnp.dot(ones_row, z, preferred_element_type=jnp.float32) * inv_b
    zc = z - mu2
    var2 = jnp.dot(ones_row, zc * zc, preferred_element_type=jnp.float32) * inv_b
    proj_ref[...] = zc * jax.lax.rsqrt(var2 + BN_EPS)        # lane-dense store


def prepare_netwrapper_params(w_bb, w1, w2, gamma1, beta1):
    """One-time parameter prep (at load time, NOT per forward call):
    zero-pad every feature dim to a 128-lane multiple and cast matmul weights
    to bf16. Weights must already be laid out as [in_features, out_features]
    (i.e. PyTorch nn.Linear weights transposed once here, at load)."""
    chw, bb_dim = w_bb.shape
    prev_dim = w1.shape[1]
    proj_dim = w2.shape[1]
    chw_p, bb_p = _round_up(chw), _round_up(bb_dim)
    prev_p, proj_p = _round_up(prev_dim), _round_up(proj_dim)

    wbb_p = jnp.pad(w_bb.astype(jnp.bfloat16),
                    ((0, chw_p - chw), (0, bb_p - bb_dim)))
    w1_p = jnp.pad(w1.astype(jnp.bfloat16),
                   ((0, bb_p - bb_dim), (0, prev_p - prev_dim)))
    w2_p = jnp.pad(w2.astype(jnp.bfloat16),
                   ((0, prev_p - prev_dim), (0, proj_p - proj_dim)))
    gb1_p = jnp.stack([
        jnp.pad(gamma1.astype(jnp.float32), (0, prev_p - prev_dim)),
        jnp.pad(beta1.astype(jnp.float32), (0, prev_p - prev_dim)),
    ])                                                       # [2, prev_p]

    dims = dict(chw=chw, bb_dim=bb_dim, prev_dim=prev_dim, proj_dim=proj_dim,
                chw_p=chw_p, bb_p=bb_p, prev_p=prev_p, proj_p=proj_p)
    return (wbb_p, w1_p, w2_p, gb1_p), dims


def make_netwrapper_forward(dims):
    """Returns forward(x, params) -> (projection, representation).
    x: [B, C, H, W] (single view) or [V, B, C, H, W] (stack of augmented views,
    processed in one pallas_call with weights resident in VMEM across views)."""
    chw, bb_dim = dims["chw"], dims["bb_dim"]
    proj_dim = dims["proj_dim"]
    chw_p, bb_p = dims["chw_p"], dims["bb_p"]
    prev_p, proj_p = dims["prev_p"], dims["proj_p"]

    def forward(x, params):
        wbb_p, w1_p, w2_p, gb1_p = params
        single_view = (x.ndim == 4)
        if single_view:
            x = x[None]
        V, B = x.shape[0], x.shape[1]

        # Flatten + bf16 cast BEFORE padding (padded copy is 2 B/elt, not 4).
        x_flat = x.reshape(V, B, chw).astype(jnp.bfloat16)
        x_p = jnp.pad(x_flat, ((0, 0), (0, 0), (0, chw_p - chw)))

        flops = 2 * V * B * (chw_p * bb_p + bb_p * prev_p + prev_p * proj_p
                             + 2 * prev_p + 2 * proj_p)
        bytes_accessed = (
            2 * (x_p.size + wbb_p.size + w1_p.size + w2_p.size)   # bf16 inputs
            + 4 * gb1_p.size                                      # f32 BN params
            + 4 * V * B * (proj_p + bb_p)                         # f32 outputs
        )
        cost = pl.CostEstimate(flops=flops,
                               transcendentals=V * (prev_p + proj_p),
                               bytes_accessed=bytes_accessed)

        # Weights: constant index_map -> block stays resident across view steps.
        x_spec = pl.BlockSpec((None, B, chw_p), lambda v: (v, 0, 0))
        wbb_spec = pl.BlockSpec((chw_p, bb_p), lambda v: (0, 0))
        w1_spec = pl.BlockSpec((bb_p, prev_p), lambda v: (0, 0))
        w2_spec = pl.BlockSpec((prev_p, proj_p), lambda v: (0, 0))
        gb1_spec = pl.BlockSpec((2, prev_p), lambda v: (0, 0))
        proj_spec = pl.BlockSpec((None, B, proj_p), lambda v: (v, 0, 0))
        rep_spec = pl.BlockSpec((None, B, bb_p), lambda v: (v, 0, 0))

        proj_pad, rep_pad = pl.pallas_call(
            _netwrapper_kernel,
            out_shape=(jax.ShapeDtypeStruct((V, B, proj_p), jnp.float32),
                       jax.ShapeDtypeStruct((V, B, bb_p), jnp.float32)),
            grid=(V,),
            in_specs=[x_spec, wbb_spec, w1_spec, w2_spec, gb1_spec],
            out_specs=(proj_spec, rep_spec),
            compiler_params=pltpu.CompilerParams(
                dimension_semantics=("parallel",)),
            cost_estimate=cost,
        )(x_p, wbb_p, w1_p, w2_p, gb1_p)

        # Padded feature lanes are exactly zero through BN/ReLU; slice them off.
        proj = proj_pad[..., :proj_dim]
        rep = rep_pad[..., :bb_dim]
        if single_view:
            proj, rep = proj[0], rep[0]
        return proj, rep

    return forward


def _reference_forward(x_nchw, w_bb, w1, w2, gamma1, beta1):
    """Pure-JAX reference with the same bf16-matmul / f32-BN precision recipe."""
    B = x_nchw.shape[0]
    xf = x_nchw.reshape(B, -1).astype(jnp.bfloat16)
    rep = jnp.dot(xf, w_bb.astype(jnp.bfloat16),
                  preferred_element_type=jnp.float32)
    h = jnp.dot(rep.astype(jnp.bfloat16), w1.astype(jnp.bfloat16),
                preferred_element_type=jnp.float32)
    mu1 = h.mean(0, keepdims=True)
    var1 = ((h - mu1) ** 2).mean(0, keepdims=True)
    h = (h - mu1) / jnp.sqrt(var1 + BN_EPS) * gamma1[None, :] + beta1[None, :]
    h = jnp.maximum(h, 0.0)
    z = jnp.dot(h.astype(jnp.bfloat16), w2.astype(jnp.bfloat16),
                preferred_element_type=jnp.float32)
    mu2 = z.mean(0, keepdims=True)
    var2 = ((z - mu2) ** 2).mean(0, keepdims=True)
    proj = (z - mu2) / jnp.sqrt(var2 + BN_EPS)
    return proj, rep


if __name__ == "__main__":
    # Small shapes consistent with the module (B > 1 so BatchNorm batch stats
    # are valid); two augmented views as in BYOL training.
    B, C, H, W = 8, 4, 16, 16
    bb_dim, prev_dim, proj_dim = 32, 64, 32
    n_views = 2

    key = jax.random.PRNGKey(0)
    kx, kbb, k1, k2 = jax.random.split(key, 4)

    x_views = jax.random.normal(kx, (n_views, B, C, H, W), dtype=jnp.float32)
    chw = C * H * W

    # Deterministic synthetic weights (stand-ins for the PyTorch-initialized
    # params), already transposed to [in, out].
    w_bb = jax.random.normal(kbb, (chw, bb_dim), dtype=jnp.float32) * (chw ** -0.5)
    w1 = jax.random.normal(k1, (bb_dim, prev_dim), dtype=jnp.float32) * (bb_dim ** -0.5)
    w2 = jax.random.normal(k2, (prev_dim, proj_dim), dtype=jnp.float32) * (prev_dim ** -0.5)
    gamma1 = jnp.ones((prev_dim,), dtype=jnp.float32)
    beta1 = jnp.zeros((prev_dim,), dtype=jnp.float32)

    # One-time prep: pad + bf16 cast hoisted out of the hot path.
    params, dims = prepare_netwrapper_params(w_bb, w1, w2, gamma1, beta1)
    fwd = jax.jit(make_netwrapper_forward(dims))

    # Multi-view call: weights resident across the view grid.
    proj, rep = fwd(x_views, params)
    jax.block_until_ready((proj, rep))
    assert proj.shape == (n_views, B, proj_dim)
    assert rep.shape == (n_views, B, bb_dim)

    for v in range(n_views):
        proj_ref, rep_ref = _reference_forward(x_views[v], w_bb, w1, w2, gamma1, beta1)
        assert jnp.allclose(rep[v], rep_ref, atol=5e-3, rtol=5e-3)
        assert jnp.allclose(proj[v], proj_ref, atol=1e-2, rtol=1e-2)

    # Single-view (4-D input) path also works.
    proj_s, rep_s = fwd(x_views[0], params)
    jax.block_until_ready((proj_s, rep_s))
    assert proj_s.shape == (B, proj_dim) and rep_s.shape == (B, bb_dim)

    print("KERNEL_OK")
</pallas_src>

<mosaic_0001>
module attributes {stable_mosaic.version = 11 : i64} {
  func.func @_netwrapper_kernel(%arg0: i32, %arg1: memref<1x8x1024xbf16, #tpu.memory_space<vmem>>, %arg2: memref<1024x128xbf16, #tpu.memory_space<vmem>>, %arg3: memref<128x128xbf16, #tpu.memory_space<vmem>>, %arg4: memref<128x128xbf16, #tpu.memory_space<vmem>>, %arg5: memref<2x128xf32, #tpu.memory_space<vmem>>, %arg6: memref<1x8x128xf32, #tpu.memory_space<vmem>>, %arg7: memref<1x8x128xf32, #tpu.memory_space<vmem>>) attributes {dimension_semantics = [#tpu.dimension_semantics<parallel>], iteration_bounds = array<i64: 2>, scalar_prefetch = 0 : i64, scratch_operands = 0 : i64, tpu.core_type = #tpu.core_type<tc>, window_params = [{transform_indices = @transform_0, window_bounds = array<i64: 1, 8, 1024>}, {pipeline_mode = #tpu.pipeline_mode<synchronous>, transform_indices = @transform_1, window_bounds = array<i64: 1024, 128>}, {pipeline_mode = #tpu.pipeline_mode<synchronous>, transform_indices = @transform_2, window_bounds = array<i64: 128, 128>}, {pipeline_mode = #tpu.pipeline_mode<synchronous>, transform_indices = @transform_3, window_bounds = array<i64: 128, 128>}, {pipeline_mode = #tpu.pipeline_mode<synchronous>, transform_indices = @transform_4, window_bounds = array<i64: 2, 128>}, {transform_indices = @transform_5, window_bounds = array<i64: 1, 8, 128>}, {transform_indices = @transform_6, window_bounds = array<i64: 1, 8, 128>}]} {
    %cst = arith.constant 1.000000e+00 : f32
    %0 = vector.broadcast %cst : f32 to vector<1x8xf32>
    %c0 = arith.constant 0 : index
    %c0_0 = arith.constant 0 : index
    %c0_1 = arith.constant 0 : index
    %1 = vector.load %arg1[%c0, %c0_0, %c0_1] : memref<1x8x1024xbf16, #tpu.memory_space<vmem>>, vector<1x8x1024xbf16>
    %2 = vector.shape_cast %1 : vector<1x8x1024xbf16> to vector<8x1024xbf16>
    %c0_2 = arith.constant 0 : index
    %c0_3 = arith.constant 0 : index
    %3 = vector.load %arg2[%c0_2, %c0_3] : memref<1024x128xbf16, #tpu.memory_space<vmem>>, vector<1024x128xbf16>
    %cst_4 = arith.constant dense<0.000000e+00> : vector<8x128xf32>
    %4 = tpu.matmul %2, %3, %cst_4 {dimension_numbers = #tpu.dot_dimension_numbers<[1], [0], [0], [1], [0, 0, 1, 1], [], []>} : vector<8x1024xbf16>, vector<1024x128xbf16>, vector<8x128xf32> -> vector<8x128xf32>
    %c0_5 = arith.constant 0 : index
    %c0_6 = arith.constant 0 : index
    %c0_7 = arith.constant 0 : index
    %5 = vector.load %arg7[%c0_5, %c0_6, %c0_7] : memref<1x8x128xf32, #tpu.memory_space<vmem>>, vector<1x8x128xf32>
    %6 = vector.shape_cast %5 : vector<1x8x128xf32> to vector<8x128xf32>
    %7 = vector.shape_cast %4 : vector<8x128xf32> to vector<1x8x128xf32>
    tpu.vector_store %arg7[%c0_5, %c0_6, %c0_7], %7 {strides = array<i32>} : memref<1x8x128xf32, #tpu.memory_space<vmem>>, vector<1x8x128xf32>,
    %8 = arith.truncf %4 : vector<8x128xf32> to vector<8x128xbf16>
    %c0_8 = arith.constant 0 : index
    %c0_9 = arith.constant 0 : index
    %9 = vector.load %arg3[%c0_8, %c0_9] : memref<128x128xbf16, #tpu.memory_space<vmem>>, vector<128x128xbf16>
    %cst_10 = arith.constant dense<0.000000e+00> : vector<8x128xf32>
    %10 = tpu.matmul %8, %9, %cst_10 {dimension_numbers = #tpu.dot_dimension_numbers<[1], [0], [0], [1], [0, 0, 1, 1], [], []>} : vector<8x128xbf16>, vector<128x128xbf16>, vector<8x128xf32> -> vector<8x128xf32>
    %cst_11 = arith.constant dense<0.000000e+00> : vector<1x128xf32>
    %11 = tpu.matmul %0, %10, %cst_11 {dimension_numbers = #tpu.dot_dimension_numbers<[1], [0], [0], [1], [0, 0, 1, 1], [], []>} : vector<1x8xf32>, vector<8x128xf32>, vector<1x128xf32> -> vector<1x128xf32>
    %cst_12 = arith.constant 1.250000e-01 : f32
    %12 = vector.broadcast %cst_12 : f32 to vector<1x128xf32>
    %13 = arith.mulf %11, %12 : vector<1x128xf32>
    %14 = vector.broadcast %13 : vector<1x128xf32> to vector<8x128xf32>
    %15 = arith.subf %10, %14 : vector<8x128xf32>
    %16 = arith.mulf %15, %15 : vector<8x128xf32>
    %cst_13 = arith.constant dense<0.000000e+00> : vector<1x128xf32>
    %17 = tpu.matmul %0, %16, %cst_13 {dimension_numbers = #tpu.dot_dimension_numbers<[1], [0], [0], [1], [0, 0, 1, 1], [], []>} : vector<1x8xf32>, vector<8x128xf32>, vector<1x128xf32> -> vector<1x128xf32>
    %cst_14 = arith.constant 1.250000e-01 : f32
    %18 = vector.broadcast %cst_14 : f32 to vector<1x128xf32>
    %19 = arith.mulf %17, %18 : vector<1x128xf32>
    %c0_15 = arith.constant 0 : index
    %c0_16 = arith.constant 0 : index
    %20 = vector.load %arg5[%c0_15, %c0_16] : memref<2x128xf32, #tpu.memory_space<vmem>>, vector<2x128xf32>
    %21 = vector.extract_strided_slice %20 {offsets = [0, 0], sizes = [1, 128], strides = [1, 1]} : vector<2x128xf32> to vector<1x128xf32>
    %cst_17 = arith.constant 9.99999974E-6 : f32
    %22 = vector.broadcast %cst_17 : f32 to vector<1x128xf32>
    %23 = arith.addf %19, %22 : vector<1x128xf32>
    %24 = math.rsqrt %23 : vector<1x128xf32>
    %25 = arith.mulf %21, %24 : vector<1x128xf32>
    %26 = vector.broadcast %25 : vector<1x128xf32> to vector<8x128xf32>
    %27 = arith.mulf %15, %26 : vector<8x128xf32>
    %28 = vector.extract_strided_slice %20 {offsets = [1, 0], sizes = [1, 128], strides = [1, 1]} : vector<2x128xf32> to vector<1x128xf32>
    %29 = vector.broadcast %28 : vector<1x128xf32> to vector<8x128xf32>
    %30 = arith.addf %27, %29 : vector<8x128xf32>
    %cst_18 = arith.constant 0.000000e+00 : f32
    %31 = vector.broadcast %cst_18 : f32 to vector<8x128xf32>
    %32 = arith.maximumf %30, %31 : vector<8x128xf32>
    %33 = arith.truncf %32 : vector<8x128xf32> to vector<8x128xbf16>
    %c0_19 = arith.constant 0 : index
    %c0_20 = arith.constant 0 : index
    %34 = vector.load %arg4[%c0_19, %c0_20] : memref<128x128xbf16, #tpu.memory_space<vmem>>, vector<128x128xbf16>
    %cst_21 = arith.constant dense<0.000000e+00> : vector<8x128xf32>
    %35 = tpu.matmul %33, %34, %cst_21 {dimension_numbers = #tpu.dot_dimension_numbers<[1], [0], [0], [1], [0, 0, 1, 1], [], []>} : vector<8x128xbf16>, vector<128x128xbf16>, vector<8x128xf32> -> vector<8x128xf32>
    %cst_22 = arith.constant dense<0.000000e+00> : vector<1x128xf32>
    %36 = tpu.matmul %0, %35, %cst_22 {dimension_numbers = #tpu.dot_dimension_numbers<[1], [0], [0], [1], [0, 0, 1, 1], [], []>} : vector<1x8xf32>, vector<8x128xf32>, vector<1x128xf32> -> vector<1x128xf32>
    %cst_23 = arith.constant 1.250000e-01 : f32
    %37 = vector.broadcast %cst_23 : f32 to vector<1x128xf32>
    %38 = arith.mulf %36, %37 : vector<1x128xf32>
    %39 = vector.broadcast %38 : vector<1x128xf32> to vector<8x128xf32>
    %40 = arith.subf %35, %39 : vector<8x128xf32>
    %41 = arith.mulf %40, %40 : vector<8x128xf32>
    %cst_24 = arith.constant dense<0.000000e+00> : vector<1x128xf32>
    %42 = tpu.matmul %0, %41, %cst_24 {dimension_numbers = #tpu.dot_dimension_numbers<[1], [0], [0], [1], [0, 0, 1, 1], [], []>} : vector<1x8xf32>, vector<8x128xf32>, vector<1x128xf32> -> vector<1x128xf32>
    %cst_25 = arith.constant 1.250000e-01 : f32
    %43 = vector.broadcast %cst_25 : f32 to vector<1x128xf32>
    %44 = arith.mulf %42, %43 : vector<1x128xf32>
    %cst_26 = arith.constant 9.99999974E-6 : f32
    %45 = vector.broadcast %cst_26 : f32 to vector<1x128xf32>
    %46 = arith.addf %44, %45 : vector<1x128xf32>
    %47 = math.rsqrt %46 : vector<1x128xf32>
    %48 = vector.broadcast %47 : vector<1x128xf32> to vector<8x128xf32>
    %49 = arith.mulf %40, %48 : vector<8x128xf32>
    %c0_27 = arith.constant 0 : index
    %c0_28 = arith.constant 0 : index
    %c0_29 = arith.constant 0 : index
    %50 = vector.load %arg6[%c0_27, %c0_28, %c0_29] : memref<1x8x128xf32, #tpu.memory_space<vmem>>, vector<1x8x128xf32>
    %51 = vector.shape_cast %50 : vector<1x8x128xf32> to vector<8x128xf32>
    %52 = vector.shape_cast %49 : vector<8x128xf32> to vector<1x8x128xf32>
    tpu.vector_store %arg6[%c0_27, %c0_28, %c0_29], %52 {strides = array<i32>} : memref<1x8x128xf32, #tpu.memory_space<vmem>>, vector<1x8x128xf32>,
    return
  }
  func.func @transform_0(%arg0: i32) -> (i32, i32, i32) {
    %c0_i32 = arith.constant 0 : i32
    %c0_i32_0 = arith.constant 0 : i32
    %c0_i32_1 = arith.constant 0 : i32
    return %arg0, %c0_i32, %c0_i32_0 : i32, i32, i32
  }
  func.func @transform_1(%arg0: i32) -> (i32, i32) {
    %c0_i32 = arith.constant 0 : i32
    %c0_i32_0 = arith.constant 0 : i32
    %c0_i32_1 = arith.constant 0 : i32
    return %c0_i32, %c0_i32_0 : i32, i32
  }
  func.func @transform_2(%arg0: i32) -> (i32, i32) {
    %c0_i32 = arith.constant 0 : i32
    %c0_i32_0 = arith.constant 0 : i32
    %c0_i32_1 = arith.constant 0 : i32
    return %c0_i32, %c0_i32_0 : i32, i32
  }
  func.func @transform_3(%arg0: i32) -> (i32, i32) {
    %c0_i32 = arith.constant 0 : i32
    %c0_i32_0 = arith.constant 0 : i32
    %c0_i32_1 = arith.constant 0 : i32
    return %c0_i32, %c0_i32_0 : i32, i32
  }
  func.func @transform_4(%arg0: i32) -> (i32, i32) {
    %c0_i32 = arith.constant 0 : i32
    %c0_i32_0 = arith.constant 0 : i32
    %c0_i32_1 = arith.constant 0 : i32
    return %c0_i32, %c0_i32_0 : i32, i32
  }
  func.func @transform_5(%arg0: i32) -> (i32, i32, i32) {
    %c0_i32 = arith.constant 0 : i32
    %c0_i32_0 = arith.constant 0 : i32
    %c0_i32_1 = arith.constant 0 : i32
    return %arg0, %c0_i32, %c0_i32_0 : i32, i32, i32
  }
  func.func @transform_6(%arg0: i32) -> (i32, i32, i32) {
    %c0_i32 = arith.constant 0 : i32
    %c0_i32_0 = arith.constant 0 : i32
    %c0_i32_1 = arith.constant 0 : i32
    return %arg0, %c0_i32, %c0_i32_0 : i32, i32, i32
  }
}

</mosaic_0001>

<bundles_post_ra>
// kernel: forward.1
= control target key start
LH: loop header
LB: loop body
LE: loop exit
PB: predicated region body
PF: predicated region fallthrough
CT: control target
= control target key end

     0   :  { %12 = vsyncpa [#allocation3], 0  ;;  %s2613_s0 = inlined_call_operand.vmem [shape: bf16[2,8,1024], index: 0, kind: input, shape index: {}]   ;;  %s2614_s1 = inlined_call_operand.vmem [shape: bf16[1024,128], index: 1, kind: input, shape index: {}]   ;;  %s2615_s2 = inlined_call_operand.vmem [shape: bf16[128,128], index: 2, kind: input, shape index: {}]   ;;  %s2616_s3 = inlined_call_operand.vmem [shape: bf16[128,128], index: 3, kind: input, shape index: {}]   ;;  %s2617_s4 = inlined_call_operand.vmem [shape: f32[2,128], index: 4, kind: input, shape index: {}]   ;;  %s2618_s5 = inlined_call_operand.hbm [shape: f32[2,8,128], index: 5, kind: output, shape index: {0}]   ;;  %s2619_s6 = inlined_call_operand.hbm [shape: f32[2,8,128], index: 6, kind: output, shape index: {1}]  }
   0x1   :  { %14 = vsyncpa [#allocation3 + $0x1], 0 }
   0x2   :  { %15 = vsyncpa [#allocation5], 0 }
   0x3   :  { %17 = vsyncpa [#allocation5 + $0x1], 0  ;;  %s2179_s21 = smov 0   ;;  %s2181_s22 = smov 0  }
   0x4   :  { %s2183_s23 = smov 0   ;;  %s2185_s24 = smov 0  }
   0x5 LB: > { %s2200_s25 = sadd.s32 4294967295, %s2137_s24   ;;  %s1623_s26 = sadd.s32 4294967294, %s2137_s24   ;;  %s2137_s24 = sphi %s2185_s24, %s2625_s24   ;;  %s2133_s23 = sphi %s2183_s23, %s2624_s23   ;;  %s2129_s22 = sphi %s2181_s22, %s2623_s22   ;;  %s2125_s21 = sphi %s2179_s21, %s2622_s21  }
   0x6   : > { %s2204_s27 = sadd.s32 1, %s2137_s24   ;;  %s140_s28 = sadd.s32 1, %s2133_s23 }
   0x7   : > { %s137_s29 = ssub.s32 %s2137_s24, %s2204_s27  ;;  %p150_p0 = scmp.ne.s32.totalorder %s2133_s23, %s2129_s22 }
   0x8   : > { %p138_p1 = scmp.eq.s32.totalorder %s137_s29, 0  ;;  %p151_p2 = scmp.eq.s32.totalorder %s2200_s25, 1 }
   0x9   : > { %p156_p3 = scmp.ne.s32.totalorder %s2129_s22, %s2125_s21  ;;  %p157_p4 = scmp.eq.s32.totalorder %s1623_s26, 1 }
   0xa   : > { %s2215_s30 = scalar_select %p138_p1, %s2133_s23, %s140_s28  }
   0xb   : > { %p2217_p5 = por %p151_p2, %p150_p0  ;;  %p2221_p6 = por %p157_p4, %p156_p3 }
   0xc   : > { %p1626_p7 = scmp.ge.s32.totalorder %s2137_s24, 1  ;;  %p221_p8 = scmp.lt.s32.totalorder %s2137_s24, 3 }
   0xe   : > { %p222_p9 = pnand %p1626_p7, %p221_p8 }
   0xf   : > { %v1951_v0 = vld [vmem:[%s2614_s1 + $0x40] sm:$0xff] (!%p222_p9)   ;;  %v1955_v4 = vld [vmem:[%s2614_s1 + $0x48] sm:$0xff] (!%p222_p9)   ;;  %v1959_v8 = vld [vmem:[%s2614_s1 + $0x50] sm:$0xff] (!%p222_p9)   ;;  %p256_p10 = scmp.lt.s32.totalorder (!%p222_p9), %s2200_s25, 1  ;;  %vm2140_vm0 = vmmov (!%p222_p9), 0   ;;  %s2469_s13 = sand.u32 (!%p222_p9), 1, %s2129_s22  }
  0x10   : > { %225 = sbr.rel (%p222_p9) target bundleno = 1654 (0x676), region = 40  ;;  %v1952_v1 = vld [vmem:[%s2614_s1 + $0xc0] sm:$0xff] (!%p222_p9)   ;;  %1730 = vmatprep.subr.bf16.mxu0 (!%p222_p9), %v1951_v0  ;;  %v1956_v5 = vld [vmem:[%s2614_s1 + $0xc8] sm:$0xff] (!%p222_p9)   ;;  %v1960_v9 = vld [vmem:[%s2614_s1 + $0xd0] sm:$0xff] (!%p222_p9)   ;;  %vm1072_vm1 = vcmask (!%p222_p9), 64512   ;;  %s1725_s26 = sshll.u32 (!%p222_p9), %s2200_s25, 7 }
  0x11   : > { %v1953_v2 = vld [vmem:[%s2614_s1] sm:$0xff] (!%p222_p9)   ;;  %1752 = vmatprep.subr.bf16.mxu1 (!%p222_p9), %v1952_v1  ;;  %v1957_v6 = vld [vmem:[%s2614_s1 + $0x8] sm:$0xff] (!%p222_p9)   ;;  %v1961_v10 = vld [vmem:[%s2614_s1 + $0x10] sm:$0xff] (!%p222_p9)   ;;  %s2541_s9 = scalar_lea.hbm (!%p222_p9), %s2619_s6, %s1725_s26  ;;  %s1506_s12 = scalar_lea.sflag (!%p222_p9), [#allocation5], %s2469_s13 }
  0x12   : > { %v1954_v3 = vld [vmem:[%s2614_s1 + $0x80] sm:$0xff] (!%p222_p9)   ;;  %1731 = vmatpush3.bf16.msra.mxu0 (!%p222_p9), %v1953_v2  ;;  %v1958_v7 = vld [vmem:[%s2614_s1 + $0x88] sm:$0xff] (!%p222_p9)   ;;  %v1962_v11 = vld [vmem:[%s2614_s1 + $0x90] sm:$0xff] (!%p222_p9)   ;;  %s2142_s16 = smov (!%p222_p9), [#allocation4]  }
  0x13   : > { %1753 = vmatpush3.bf16.msra.mxu1 (!%p222_p9), %v1954_v3  ;;  %1732 = vmatprep.subr.bf16.mxu0 (!%p222_p9), %v1955_v4  ;;  %v1963_v12 = vld [vmem:[%s2614_s1 + $0x58] sm:$0xff] (!%p222_p9)   ;;  %v1967_v16 = vld [vmem:[%s2614_s1 + $0x60] sm:$0xff] (!%p222_p9)   ;;  %v1971_v20 = vld [vmem:[%s2614_s1 + $0x68] sm:$0xff] (!%p222_p9)   ;;  %s2047_s17 = sshll.u32 (!%p222_p9), %s2142_s16, 4  ;;  %s2048_s17 = int_to_ptr.vmem [resolvable:$false] %s2047_s17 }
  0x14   : > { %1754 = vmatprep.subr.bf16.mxu1 (!%p222_p9), %v1956_v5  ;;  %v1964_v13 = vld [vmem:[%s2614_s1 + $0xd8] sm:$0xff] (!%p222_p9)   ;;  %v1968_v17 = vld [vmem:[%s2614_s1 + $0xe0] sm:$0xff] (!%p222_p9)   ;;  %v1972_v21 = vld [vmem:[%s2614_s1 + $0xe8] sm:$0xff] (!%p222_p9)   ;;  %s2049_s18 = scalar_lea.vmem (!%p222_p9), %s2048_s17, 256 }
  0x15   : > { %v1965_v14 = vld [vmem:[%s2614_s1 + $0x18] sm:$0xff] (!%p222_p9)   ;;  %v1969_v18 = vld [vmem:[%s2614_s1 + $0x20] sm:$0xff] (!%p222_p9)   ;;  %v1973_v22 = vld [vmem:[%s2614_s1 + $0x28] sm:$0xff] (!%p222_p9)  }
  0x16   : > { %1733 = vmatpush3.bf16.msra.mxu0 (!%p222_p9), %v1957_v6  ;;  %v1966_v15 = vld [vmem:[%s2614_s1 + $0x98] sm:$0xff] (!%p222_p9)   ;;  %v1970_v19 = vld [vmem:[%s2614_s1 + $0xa0] sm:$0xff] (!%p222_p9)   ;;  %v1974_v23 = vld [vmem:[%s2614_s1 + $0xa8] sm:$0xff] (!%p222_p9)  }
  0x17   : > { %1755 = vmatpush3.bf16.msra.mxu1 %v1958_v7  ;;  %1734 = vmatprep.subr.bf16.mxu0 %v1959_v8  ;;  %s257_s10 = scalar_select %p256_p10, %s2200_s25, 1  ;;  %v1975_v24 = vld [vmem:[%s2614_s1 + $0x70] sm:$0xff]   ;;  %v1979_v28 = vld [vmem:[%s2614_s1 + $0x78] sm:$0xff]   ;;  %v1987_v38 = vld [vmem:[%s2614_s1 + $0x140] sm:$0xff]  }
  0x18   : > { %1756 = vmatprep.subr.bf16.mxu1 %v1960_v9  ;;  %v1976_v25 = vld [vmem:[%s2614_s1 + $0xf0] sm:$0xff]   ;;  %v1980_v29 = vld [vmem:[%s2614_s1 + $0xf8] sm:$0xff]   ;;  %v1988_v39 = vld [vmem:[%s2614_s1 + $0x1c0] sm:$0xff]  }
  0x19   : > { %v1977_v26 = vld [vmem:[%s2614_s1 + $0x30] sm:$0xff]   ;;  %s1729_s19 = sshll.u32 %s257_s10, 5  ;;  %v1981_v30 = vld [vmem:[%s2614_s1 + $0x38] sm:$0xff]   ;;  %v1989_v40 = vld [vmem:[%s2614_s1 + $0x100] sm:$0xff]   ;;  %s1627_s10 = sshll.u32 %s2469_s13, 3 }
  0x1a   : > { %1735 = vmatpush3.bf16.msra.mxu0 %v1961_v10  ;;  %v1978_v27 = vld [vmem:[%s2614_s1 + $0xb0] sm:$0xff]   ;;  %s2322_s14 = scalar_lea.vmem %s2613_s0, %s1729_s19  ;;  %v1982_v31 = vld [vmem:[%s2614_s1 + $0xb8] sm:$0xff]   ;;  %v1990_v41 = vld [vmem:[%s2614_s1 + $0x180] sm:$0xff]  }
  0x1b   : > { %1757 = vmatpush3.bf16.msra.mxu1 %v1962_v11  ;;  %1736 = vmatprep.subr.bf16.mxu0 %v1963_v12  ;;  %v262_v32 = vld [vmem:[%s2322_s14] sm:$0xff]  ;;  %v263_v33 = vld [vmem:[%s2322_s14 + $0x8] sm:$0xff]  ;;  %v1995_v46 = vld [vmem:[%s2614_s1 + $0x150] sm:$0xff]  }
  0x1c   : > { %1758 = vmatprep.subr.bf16.mxu1 %v1964_v13  ;;  %v1631_v34 = vcombine.low %v262_v32, %v262_v32  ;;  %v1632_v35 = vcombine.high %v262_v32, %v262_v32  ;;  %v1633_v36 = vcombine.low %v263_v33, %v263_v33  ;;  %v1634_v37 = vcombine.high %v263_v33, %v263_v33  ;;  %v1991_v42 = vld [vmem:[%s2614_s1 + $0x148] sm:$0xff]   ;;  %v1996_v47 = vld [vmem:[%s2614_s1 + $0x1d0] sm:$0xff]   ;;  %v1999_v50 = vld [vmem:[%s2614_s1 + $0x158] sm:$0xff]  }
  0x1d   : > { %v1992_v43 = vld [vmem:[%s2614_s1 + $0x1c8] sm:$0xff]   ;;  %v1997_v48 = vld [vmem:[%s2614_s1 + $0x110] sm:$0xff]   ;;  %v2000_v51 = vld [vmem:[%s2614_s1 + $0x1d8] sm:$0xff]   ;;  %v2139_v13 = vmov 0.0  }
  0x1e   : > { %1737 = vmatpush3.bf16.msra.mxu0 %v1965_v14  ;;  %838 = vmatprep.mubr.bf16.mxu0 %v1632_v35  ;;  %v1993_v44 = vld [vmem:[%s2614_s1 + $0x108] sm:$0xff]   ;;  %v1998_v49 = vld [vmem:[%s2614_s1 + $0x190] sm:$0xff]   ;;  %v2001_v52 = vld [vmem:[%s2614_s1 + $0x118] sm:$0xff]  }
  0x1f   : > { %1759 = vmatpush3.bf16.msra.mxu1 %v1966_v15  ;;  %1738 = vmatprep.subr.bf16.mxu0 %v1967_v16  ;;  %v1994_v45 = vld [vmem:[%s2614_s1 + $0x188] sm:$0xff]   ;;  %v2002_v53 = vld [vmem:[%s2614_s1 + $0x198] sm:$0xff]   ;;  %v2003_v54 = vld [vmem:[%s2614_s1 + $0x160] sm:$0xff]  }
  0x20   : > { %1760 = vmatprep.subr.bf16.mxu1 %v1968_v17  ;;  %878 = vmatprep.mubr.bf16.mxu1 %v1634_v37  ;;  %v2004_v55 = vld [vmem:[%s2614_s1 + $0x1e0] sm:$0xff]   ;;  %v2007_v58 = vld [vmem:[%s2614_s1 + $0x168] sm:$0xff]   ;;  %v2011_v62 = vld [vmem:[%s2614_s1 + $0x170] sm:$0xff]  }
  0x21   : > { %v2005_v56 = vld [vmem:[%s2614_s1 + $0x120] sm:$0xff]   ;;  %v2008_v59 = vld [vmem:[%s2614_s1 + $0x1e8] sm:$0xff]   ;;  %v2012_v63 = vld [vmem:[%s2614_s1 + $0x1f0] sm:$0xff]  }
  0x22   : > { %1739 = vmatpush3.bf16.msra.mxu0 %v1969_v18  ;;  %v2006_v57 = vld [vmem:[%s2614_s1 + $0x1a0] sm:$0xff]   ;;  %v2009_v60 = vld [vmem:[%s2614_s1 + $0x128] sm:$0xff]   ;;  %v2013_v0 = vld [vmem:[%s2614_s1 + $0x130] sm:$0xff]  }
  0x23   : > { %1761 = vmatpush3.bf16.msra.mxu1 %v1970_v19  ;;  %1740 = vmatprep.subr.bf16.mxu0 %v1971_v20  ;;  %v2010_v61 = vld [vmem:[%s2614_s1 + $0x1a8] sm:$0xff]   ;;  %v2014_v1 = vld [vmem:[%s2614_s1 + $0x1b0] sm:$0xff]   ;;  %v2015_v2 = vld [vmem:[%s2614_s1 + $0x178] sm:$0xff]  }
  0x24   : > { %1762 = vmatprep.subr.bf16.mxu1 %v1972_v21  ;;  %v2016_v3 = vld [vmem:[%s2614_s1 + $0x1f8] sm:$0xff]   ;;  %v264_v6 = vld [vmem:[%s2322_s14 + $0x10] sm:$0xff]  ;;  %v2023_v12 = vld [vmem:[%s2615_s2] sm:$0xff]  }
  0x25   : > { %v2017_v4 = vld [vmem:[%s2614_s1 + $0x138] sm:$0xff]   ;;  %v1635_v7 = vcombine.low %v264_v6, %v264_v6  ;;  %v1636_v8 = vcombine.high %v264_v6, %v264_v6  ;;  %v2024_v14 = vld [vmem:[%s2615_s2 + $0x8] sm:$0xff]   ;;  %v2025_v15 = vld [vmem:[%s2615_s2 + $0x10] sm:$0xff]  }
  0x26   : > { %1741 = vmatpush3.bf16.msra.mxu0 %v1973_v22  ;;  %v2018_v5 = vld [vmem:[%s2614_s1 + $0x1b8] sm:$0xff]   ;;  %v2027_v17 = vld [vmem:[%s2615_s2 + $0x20] sm:$0xff]   ;;  %v2028_v18 = vld [vmem:[%s2615_s2 + $0x28] sm:$0xff]  }
  0x27   : > { %1763 = vmatpush3.bf16.msra.mxu1 %v1974_v23  ;;  %1742 = vmatprep.subr.bf16.mxu0 %v1975_v24  ;;  %v265_v9 = vld [vmem:[%s2322_s14 + $0x18] sm:$0xff]  ;;  %v2029_v19 = vld [vmem:[%s2615_s2 + $0x30] sm:$0xff]   ;;  %s2474_s14 = scalar_lea.vmem [#allocation4], %s1627_s10 }
  0x28   : > { %1764 = vmatprep.subr.bf16.mxu1 %v1976_v25  ;;  %v1637_v10 = vcombine.low %v265_v9, %v265_v9  ;;  %v1638_v11 = vcombine.high %v265_v9, %v265_v9  ;;  %v2026_v16 = vld [vmem:[%s2615_s2 + $0x18] sm:$0xff]   ;;  %s1532_s11 = sshll.u32 %s2474_s14, 4  ;;  %s1533_s11 = int_to_ptr.vmem [resolvable:$true] %s1532_s11 }
  0x29   : > { %v2030_v20 = vld [vmem:[%s2615_s2 + $0x38] sm:$0xff]   ;;  %s2043_s15 = scalar_lea.vmem %s1533_s11, 128  ;;  %p2050_p0 = scmp.lt.s32.totalorder %s1533_s11, %s2048_s17 }
  0x2a   : > { %1743 = vmatpush3.bf16.msra.mxu0 %v1977_v26  ;;  %p2044_p11 = scmp.ne.s32.totalorder %s1533_s11, %s2043_s15  ;;  %p2051_p1 = scmp.lt.s32.totalorder %s2049_s18, %s2043_s15 }
  0x2b   : > { %1765 = vmatpush3.bf16.msra.mxu1 %v1978_v27  ;;  %1744 = vmatprep.subr.bf16.mxu0 %v1979_v28 }
  0x2c   : > { %1766 = vmatprep.subr.bf16.mxu1 %v1980_v29  ;;  %p2045_p12 = pnand %p2044_p11, %p2217_p5  ;;  %p2052_p2 = por %p2051_p1, %p2050_p0 }
  0x2e   : > { %1745 = vmatpush3.bf16.msra.mxu0 %v1981_v30  ;;  %p2046_p13 = pneg %p2045_p12 }
  0x2f   : > { %1767 = vmatpush3.bf16.msra.mxu1 %v1982_v31  ;;  %1774 = vmatprep.subr.bf16.mxu0 %v1987_v38 }
  0x30   : > { %1796 = vmatprep.subr.bf16.mxu1 %v1988_v39  ;;  %p2053_p3 = pnand %p2052_p2, %p2046_p13 }
  0x31   : > { %839 = vmatmul.mubr.bf16.vlgmr.msra.gmra.mrb[0].mxu0 %v1631_v34 }
  0x32   : > { %879 = vmatmul.mubr.bf16.vlgmr.msra.gmra.mrb[0].mxu1 %v1633_v36  ;;  %1775 = vmatpush3.bf16.msra.mxu0 %v1989_v40 }
  0x33   : > { %1797 = vmatpush3.bf16.msra.mxu1 %v1990_v41  ;;  %1776 = vmatprep.subr.bf16.mxu0 %v1991_v42 }
  0x34   : > { %1798 = vmatprep.subr.bf16.mxu1 %v1992_v43  ;;  %918 = vmatprep.mubr.bf16.mxu0 %v1636_v8 }
  0x35   : > { %958 = vmatprep.mubr.bf16.mxu1 %v1638_v11 }
  0x36   : > { %1777 = vmatpush3.bf16.msra.mxu0 %v1993_v44 }
  0x37   : > { %1799 = vmatpush3.bf16.msra.mxu1 %v1994_v45  ;;  %1778 = vmatprep.subr.bf16.mxu0 %v1995_v46 }
  0x38   : > { %1800 = vmatprep.subr.bf16.mxu1 %v1996_v47 }
  0x3a   : > { %1779 = vmatpush3.bf16.msra.mxu0 %v1997_v48  ;;  %v2141_v48 = vmov 1.0  }
  0x3b   : > { %1801 = vmatpush3.bf16.msra.mxu1 %v1998_v49  ;;  %1780 = vmatprep.subr.bf16.mxu0 %v1999_v50  ;;  %v1147_v50 = vlaneseq }
  0x3c   : > { %1802 = vmatprep.subr.bf16.mxu1 %v2000_v51 }
  0x3d   : > { %v1148_v51 = vshrl.u32 %v1147_v50, 7 }
  0x3e   : > { %1781 = vmatpush3.bf16.msra.mxu0 %v2001_v52 }
  0x3f   : > { %1803 = vmatpush3.bf16.msra.mxu1 %v2002_v53  ;;  %1782 = vmatprep.subr.bf16.mxu0 %v2003_v54  ;;  %v2484_v52 = vsub.s32 0, %v1148_v51  ;;  %v1235_v8 = vsub.s32 1, %v1148_v51 }
  0x40   : > { %1804 = vmatprep.subr.bf16.mxu1 %v2004_v55 }
  0x42   : > { %1783 = vmatpush3.bf16.msra.mxu0 %v2005_v56 }
  0x43   : > { %1805 = vmatpush3.bf16.msra.mxu1 %v2006_v57  ;;  %1784 = vmatprep.subr.bf16.mxu0 %v2007_v58 }
  0x44   : > { %1806 = vmatprep.subr.bf16.mxu1 %v2008_v59  ;;  %v2031_v59 = vld [vmem:[%s2616_s3] sm:$0xff]  }
  0x46   : > { %1785 = vmatpush3.bf16.msra.mxu0 %v2009_v60  ;;  %v2032_v60 = vld [vmem:[%s2616_s3 + $0x8] sm:$0xff]  }
  0x47   : > { %1807 = vmatpush3.bf16.msra.mxu1 %v2010_v61  ;;  %1786 = vmatprep.subr.bf16.mxu0 %v2011_v62  ;;  %v2033_v61 = vld [vmem:[%s2616_s3 + $0x10] sm:$0xff]   ;;  %v2034_v62 = vld [vmem:[%s2616_s3 + $0x18] sm:$0xff]  }
  0x48   : > { %1808 = vmatprep.subr.bf16.mxu1 %v2012_v63  ;;  %v2035_v63 = vld [vmem:[%s2616_s3 + $0x20] sm:$0xff]  }
  0x4a   : > { %1787 = vmatpush3.bf16.msra.mxu0 %v2013_v0  ;;  %v2036_v0 = vld [vmem:[%s2616_s3 + $0x28] sm:$0xff]  }
  0x4b   : > { %1809 = vmatpush3.bf16.msra.mxu1 %v2014_v1  ;;  %1788 = vmatprep.subr.bf16.mxu0 %v2015_v2  ;;  %v2037_v1 = vld [vmem:[%s2616_s3 + $0x30] sm:$0xff]   ;;  %v2038_v2 = vld [vmem:[%s2616_s3 + $0x38] sm:$0xff]  }
  0x4c   : > { %1810 = vmatprep.subr.bf16.mxu1 %v2016_v3 }
  0x4e   : > { %1789 = vmatpush3.bf16.msra.mxu0 %v2017_v4 }
  0x4f   : > { %1811 = vmatpush3.bf16.msra.mxu1 %v2018_v5  ;;  %1844 = vmatprep.subr.bf16.mxu0 %v2139_v13 }
  0x50   : > { %1864 = vmatprep.subr.mxu1 %v2139_v13 }
  0x51   : > { %919 = vmatmul.mubr.bf16.vlgmr.msra.gmra.mrb[4].mxu0 %v1635_v7  ;;  %v1224_v7 = vld [vmem:[%s2617_s4] sm:$0x3] }
  0x52   : > { %959 = vmatmul.mubr.bf16.vlgmr.msra.gmra.mrb[4].mxu1 %v1637_v10  ;;  %1845 = vmatpush3.bf16.msra.mxu0 %v2023_v12  ;;  %v1236_v12 = vrot.slane %v1224_v7, %v1235_v8 }
  0x53   : > { %1846 = vmatprep.subr.bf16.mxu0 %v2139_v13  ;;  %1860 = vmatprep.mubr.msk.bf16.mxu0 %vm2140_vm0, %v2139_v13 }
  0x54   : > { %1866 = vmatprep.mubr.msk.f32.mxu1 %vm2140_vm0, %v2139_v13 }
  0x56   : > { %1847 = vmatpush3.bf16.msra.mxu0 %v2024_v14 }
  0x57   : > { %1848 = vmatprep.subr.bf16.mxu0 %v2139_v13 }
  0x5a   : > { %1849 = vmatpush3.bf16.msra.mxu0 %v2025_v15 }
  0x5b   : > { %1850 = vmatprep.subr.bf16.mxu0 %v2139_v13 }
  0x5e   : > { %1851 = vmatpush3.bf16.msra.mxu0 %v2026_v16 }
  0x5f   : > { %1852 = vmatprep.subr.bf16.mxu0 %v2139_v13 }
  0x62   : > { %1853 = vmatpush3.bf16.msra.mxu0 %v2027_v17 }
  0x63   : > { %1854 = vmatprep.subr.bf16.mxu0 %v2139_v13 }
  0x66   : > { %1855 = vmatpush3.bf16.msra.mxu0 %v2028_v18 }
  0x67   : > { %1856 = vmatprep.subr.bf16.mxu0 %v2139_v13 }
  0x6a   : > { %1857 = vmatpush3.bf16.msra.mxu0 %v2029_v19 }
  0x6b   : > { %1858 = vmatprep.subr.bf16.mxu0 %v2139_v13 }
  0x6e   : > { %1859 = vmatpush3.bf16.msra.mxu0 %v2030_v20 }
  0x6f   : > { %1894 = vmatprep.subr.mxu0 %v2139_v13 }
 0x104   : > { %v1746_v21 = vpop.f32.mrb[0].mxu0 }
 0x105   : > { %v1768_v22 = vpop.f32.mrb[0].mxu1  ;;  %v1747_v23 = vpop.f32.mrb[1].mxu0 }
 0x106   : > { %v1769_v24 = vpop.f32.mrb[1].mxu1  ;;  %v1748_v25 = vadd.f32 %v1747_v23, %v1746_v21  ;;  %v1749_v27 = vpop.f32.mrb[2].mxu0 }
 0x107   : > { %v1770_v26 = vadd.f32 %v1769_v24, %v1768_v22  ;;  %v1771_v28 = vpop.f32.mrb[2].mxu1  ;;  %v1750_v29 = vpop.f32.mrb[3].mxu0 }
 0x108   : > { %v1772_v30 = vpop.f32.mrb[3].mxu1 }
 0x109   : > { %v881_v31 = vadd.f32 %v1770_v26, %v1748_v25 }
 0x124   : > { %v1790_v32 = vpop.f32.mrb[4].mxu0 }
 0x125   : > { %v1812_v33 = vpop.f32.mrb[4].mxu1  ;;  %v1791_v34 = vpop.f32.mrb[5].mxu0 }
 0x126   : > { %v1813_v35 = vpop.f32.mrb[5].mxu1  ;;  %v1792_v36 = vadd.f32 %v1791_v34, %v1790_v32  ;;  %v1793_v38 = vpop.f32.mrb[6].mxu0 }
 0x127   : > { %v1814_v37 = vadd.f32 %v1813_v35, %v1812_v33  ;;  %v1815_v39 = vpop.f32.mrb[6].mxu1  ;;  %v1794_v40 = vpop.f32.mrb[7].mxu0 }
 0x128   : > { %v1816_v41 = vpop.f32.mrb[7].mxu1  ;;  %v921_v42 = vadd.f32 %v1792_v36, %v881_v31 }
 0x12a   : > { %v961_v43 = vadd.f32 %v1814_v37, %v921_v42 }
 0x12c   : > { %v967_v44 = vpack.c.bf16 %v961_v43, %v961_v43  ;;  %966 = vst [vmem:[%s2474_s14] sm:$0xff] %v961_v43 }
 0x12e   : > { %1861 = vmatmul.mubr.bf16.vlgmr.msra.gmra.mrb[8].mxu0 %v967_v44 }
 0x12f   : > { %1896 = vmatprep.mubr.msk.f32.mxu0 %vm2140_vm0, %v2139_v13 }
 0x201   : > { %v1066_v45 = vpop.f32.mrb[8].mxu0 }
 0x202   : > { %v1862_v46 = vpop.f32.mrb[9].mxu0  ;;  %1865 = vmatpush3.msra.mxu1 %v1066_v45 }
 0x203   : > { %v1069_v47 = vpop.f32.mrb[10].mxu0  ;;  %1867 = vmatmul.mubr.msk.f32.vlgmr.msra.gmra.mrb[8].mxu1 %vm1072_vm1, %v2141_v48  ;;  %1869 = vmatprep.subr.mxu1 %v2139_v13 }
 0x204   : > { %v1863_v49 = vpop.f32.mrb[11].mxu0  ;;  %1871 = vmatprep.mubr.msk.f32.mxu1 %vm2140_vm0, %v2139_v13 }
 0x2d6   : > { %v1142_v53 = vpop.f32.mrb[8].mxu1 }
 0x2d7   : > { %v1146_v54 = vmul.f32 0.125, %v1142_v53  ;;  %v1868_v55 = vpop.f32.mrb[9].mxu1 }
 0x2d9   : > { %v1150_v56 = vrot.slane %v1146_v54, %v2484_v52 }
 0x2db   : > { %v1151_v57 = vsub.f32 %v1066_v45, %v1150_v56 }
 0x2dd   : > { %v1152_v58 = vmul.f32 %v1151_v57, %v1151_v57 }
 0x2df   : > { %1870 = vmatpush3.msra.mxu1 %v1152_v58 }
 0x2e0   : > { %1872 = vmatmul.mubr.msk.f32.vlgmr.msra.gmra.mrb[10].mxu1 %vm1072_vm1, %v2141_v48  ;;  %1874 = vmatprep.subr.bf16.mxu1 %v2139_v13 }
 0x2e1   : > { %1875 = vmatpush3.bf16.msra.mxu1 %v2031_v59  ;;  %1890 = vmatprep.mubr.msk.bf16.mxu1 %vm2140_vm0, %v2139_v13 }
 0x2e2   : > { %1876 = vmatprep.subr.bf16.mxu1 %v2139_v13 }
 0x2e5   : > { %1877 = vmatpush3.bf16.msra.mxu1 %v2032_v60 }
 0x2e6   : > { %1878 = vmatprep.subr.bf16.mxu1 %v2139_v13 }
 0x2e9   : > { %1879 = vmatpush3.bf16.msra.mxu1 %v2033_v61 }
 0x2ea   : > { %1880 = vmatprep.subr.bf16.mxu1 %v2139_v13 }
 0x2ed   : > { %1881 = vmatpush3.bf16.msra.mxu1 %v2034_v62 }
 0x2ee   : > { %1882 = vmatprep.subr.bf16.mxu1 %v2139_v13 }
 0x2f1   : > { %1883 = vmatpush3.bf16.msra.mxu1 %v2035_v63 }
 0x2f2   : > { %1884 = vmatprep.subr.bf16.mxu1 %v2139_v13 }
 0x2f5   : > { %1885 = vmatpush3.bf16.msra.mxu1 %v2036_v0 }
 0x2f6   : > { %1886 = vmatprep.subr.bf16.mxu1 %v2139_v13 }
 0x2f9   : > { %1887 = vmatpush3.bf16.msra.mxu1 %v2037_v1 }
 0x2fa   : > { %1888 = vmatprep.subr.bf16.mxu1 %v2139_v13 }
 0x2fd   : > { %1889 = vmatpush3.bf16.msra.mxu1 %v2038_v2 }
 0x3b3   : > { %v1219_v3 = vpop.f32.mrb[10].mxu1 }
 0x3b4   : > { %v1223_v4 = vmul.f32 0.125, %v1219_v3  ;;  %v1873_v5 = vpop.f32.mrb[11].mxu1 }
 0x3b6   : > { %v1225_v6 = vadd.f32 1e-05, %v1223_v4 }
 0x3b8   : > { %2039 = vrsqrt.f32 %v1225_v6 }
 0x3c2   : > { %v2040_v9 = vpop.eup %2039 }
 0x3c3   : > { %v1227_v10 = vmul.f32 %v2040_v9, %v1224_v7 }
 0x3c5   : > { %v1231_v11 = vrot.slane %v1227_v10, %v2484_v52 }
 0x3c7   : > { %v1232_v14 = vmul.f32 %v1231_v11, %v1151_v57 }
 0x3c9   : > { %v1237_v15 = vadd.f32 %v1236_v12, %v1232_v14 }
 0x3cb   : > { %v1238_v16 = vmax.f32 %v1237_v15, 0.0 }
 0x3cd   : > { %v1239_v17 = vpack.c.bf16 %v1238_v16, %v1238_v16 }
 0x3cf   : > { %1891 = vmatmul.mubr.bf16.vlgmr.msra.gmra.mrb[12].mxu1 %v1239_v17 }
 0x4a2   : > { %v1338_v18 = vpop.f32.mrb[12].mxu1 }
 0x4a3   : > { %v1892_v19 = vpop.f32.mrb[13].mxu1  ;;  %1895 = vmatpush3.msra.mxu0 %v1338_v18 }
 0x4a4   : > { %v1341_v20 = vpop.f32.mrb[14].mxu1  ;;  %1897 = vmatmul.mubr.msk.f32.vlgmr.msra.gmra.mrb[12].mxu0 %vm1072_vm1, %v2141_v48  ;;  %1899 = vmatprep.subr.mxu0 %v2139_v13 }
 0x4a5   : > { %v1893_v21 = vpop.f32.mrb[15].mxu1  ;;  %1901 = vmatprep.mubr.msk.f32.mxu0 %vm2140_vm0, %v2139_v13 }
 0x577   : > { %v1410_v22 = vpop.f32.mrb[12].mxu0 }
 0x578   : > { %v1414_v23 = vmul.f32 0.125, %v1410_v22  ;;  %v1898_v24 = vpop.f32.mrb[13].mxu0 }
 0x57a   : > { %v1418_v25 = vrot.slane %v1414_v23, %v2484_v52 }
 0x57c   : > { %v1419_v26 = vsub.f32 %v1338_v18, %v1418_v25 }
 0x57e   : > { %v1420_v27 = vmul.f32 %v1419_v26, %v1419_v26 }
 0x580   : > { %1900 = vmatpush3.msra.mxu0 %v1420_v27 }
 0x581   : > { %1902 = vmatmul.mubr.msk.f32.vlgmr.msra.gmra.mrb[14].mxu0 %vm1072_vm1, %v2141_v48 }
 0x582   : > { %2056 = shalt.err (!%p2053_p3)
}
 0x583   : > { %s2057_s14 = scalar_lea.hbm %s2541_s9, 128  ;;  %s2061_s28 = scalar_lea.hbm %s2619_s6, 256 }
 0x584   : > { %p2058_p4 = scmp.ne.s32.totalorder %s2541_s9, %s2057_s14  ;;  %p2062_p9 = scmp.lt.u32.totalorder %s2541_s9, %s2619_s6 }
 0x585   : > { %p2063_p10 = scmp.lt.u32.totalorder %s2061_s28, %s2057_s14  ;;  %p2065_p12 = scmp.lt.u32.totalorder %s2057_s14, %s2541_s9 }
 0x586   : > { %p2059_p7 = pnand %p2058_p4, %p2217_p5 }
 0x587   : > { %p2064_p11 = por %p2063_p10, %p2062_p9 }
 0x588   : > { %p2060_p8 = pneg %p2059_p7 }
 0x589   : > { %p2066_p13 = por %p2065_p12, %p2064_p11 }
 0x58b   : > { %p2067_p0 = pnand %p2066_p13, %p2060_p8 }
 0x58d   : > { %2070 = shalt.err (!%p2067_p0)
}
 0x58e   : > { %1905 = dma.vmem_to_hbm [thread:$0]  (%p2217_p5), %s1533_s11, 128, %s2541_s9, %s1506_s12  }
 0x58f   : > { %s248_s15 = scalar_lea.vmem [#allocation2], %s1627_s10  ;;  %s2570_s19 = scalar_lea.hbm %s2618_s5, %s1725_s26 }
 0x590   : > { %s1519_s17 = sshll.u32 %s248_s15, 4  ;;  %s1501_s9 = scalar_lea.sflag [#allocation3], %s2469_s13  ;;  %s2572_s17 = int_to_ptr.vmem [resolvable:$true] %s1519_s17 }
 0x591   : > { %s2071_s11 = scalar_lea.vmem %s2572_s17, 128  ;;  %s2143_s10 = smov [#allocation2]  }
 0x592   : > { %p2072_p1 = scmp.ne.s32.totalorder %s2572_s17, %s2071_s11  ;;  %s2075_s12 = sshll.u32 %s2143_s10, 4  ;;  %s2076_s12 = int_to_ptr.vmem [resolvable:$false] %s2075_s12 }
 0x593   : > { %s2077_s25 = scalar_lea.vmem %s2076_s12, 256  ;;  %p2078_p4 = scmp.lt.s32.totalorder %s2572_s17, %s2076_s12 }
 0x594   : > { %p2073_p2 = pnand %p2072_p1, %p2217_p5  ;;  %p2079_p7 = scmp.lt.s32.totalorder %s2077_s25, %s2071_s11 }
 0x596   : > { %p2074_p3 = pneg %p2073_p2  ;;  %p2080_p8 = por %p2079_p7, %p2078_p4 }
 0x598   : > { %p2081_p9 = pnand %p2080_p8, %p2074_p3 }
 0x654   : > { %v1487_v13 = vpop.f32.mrb[14].mxu0 }
 0x655   : > { %v1491_v28 = vmul.f32 0.125, %v1487_v13  ;;  %v1903_v29 = vpop.f32.mrb[15].mxu0 }
 0x657   : > { %v1492_v30 = vadd.f32 1e-05, %v1491_v28 }
 0x659   : > { %2041 = vrsqrt.f32 %v1492_v30 }
 0x663   : > { %v2042_v31 = vpop.eup %2041 }
 0x664   : > { %v1497_v32 = vrot.slane %v2042_v31, %v2484_v52 }
 0x666   : > { %v1498_v33 = vmul.f32 %v1497_v32, %v1419_v26 }
 0x668   : > { %1499 = vst [vmem:[%s248_s15] sm:$0xff] %v1498_v33 }
 0x669   : > { %2084 = shalt.err (!%p2081_p9)
}
 0x66a   : > { %s2085_s13 = scalar_lea.hbm %s2570_s19, 128  ;;  %s2089_s28 = scalar_lea.hbm %s2618_s5, 256 }
 0x66b   : > { %p2086_p10 = scmp.ne.s32.totalorder %s2570_s19, %s2085_s13  ;;  %p2090_p13 = scmp.lt.u32.totalorder %s2570_s19, %s2618_s5 }
 0x66c   : > { %p2091_p0 = scmp.lt.u32.totalorder %s2089_s28, %s2085_s13  ;;  %p2093_p2 = scmp.lt.u32.totalorder %s2085_s13, %s2570_s19 }
 0x66d   : > { %p2087_p11 = pnand %p2086_p10, %p2217_p5 }
 0x66e   : > { %p2092_p1 = por %p2091_p0, %p2090_p13 }
 0x66f   : > { %p2088_p12 = pneg %p2087_p11 }
 0x670   : > { %p2094_p3 = por %p2093_p2, %p2092_p1 }
 0x672   : > { %p2095_p4 = pnand %p2094_p3, %p2088_p12 }
 0x674   : > { %2098 = shalt.err (!%p2095_p4)
}
 0x675   : > { %1904 = dma.vmem_to_hbm [thread:$0]  (%p2217_p5), %s2572_s17, 128, %s2570_s19, %s1501_s9  }
 0x676 PF: > { %p1915_p7 = scmp.ge.s32.totalorder %s2137_s24, 2  ;;  %s1544_s15 = sand.u32 1, %s2125_s21  }
 0x677   : > { %s1545_s18 = scalar_lea.sflag [#allocation3], %s1544_s15 }
 0x678   : > { %p1909_p8 = pnand %p1915_p7, %p2221_p6 }
 0x67a   : > { %2116 = dma.done.wait (!%p1909_p8), %s1545_s18, 128  }
 0x67b   : > { %2118 = vsyncadd (!%p1909_p8), %s1545_s18, 4294967168  ;;  %s1554_s14 = scalar_lea.sflag [#allocation5], %s1544_s15 }
 0x67c   : > { %2120 = dma.done.wait (!%p1909_p8), %s1554_s14, 128  }
 0x67d   : > { %2122 = vsyncadd (!%p1909_p8), %s1554_s14, 4294967168  ;;  %p20_p5 = scmp.ge.s32.totalorder %s2204_s27, 4   ;;  %s2622_s21 = smov %s2129_s22 }
 0x67e   : > { %s2623_s22 = smov %s2133_s23  ;;  %s2624_s23 = smov %s2215_s30 }
 0x67f   : > { %s2625_s24 = smov %s2204_s27  ;;  %22 = sbr.rel (!%p20_p5) target bundleno = 5 (0x5), region = 92 }
 0x686   :  { %1559 = vsyncpa [#allocation3], 1 }
 0x687   :  { %1561 = vsyncpa [#allocation3 + $0x1], 1 }
 0x688   :  { %1562 = vsyncpa [#allocation5], 1 }
 0x689   :  { %1564 = vsyncpa [#allocation5 + $0x1], 1 }

</bundles_post_ra>
